<compile_context>
chip_gen: v7x
topology: tpu7x:2x2x1
jax: 0.10.0
libtpu: 0.0.40
codegen_flags: <defaults>
</compile_context>

<pallas_src>
import functools
import math

import jax
import jax.numpy as jnp
from jax.experimental import pallas as pl
from jax.experimental.pallas import tpu as pltpu


def _gcn_block_kernel(n_layer, batch_tile, n_nodes, d_pad,
                      x_ref, adj_ref, w_ref, b_ref, o_ref):
    """Fused GCN block over a tile of `batch_tile` graphs.

    x_ref:   (Bt, N, D)   bf16  node features (feature dim zero-padded to D)
    adj_ref: (Bt, N, N)   bf16  dense adjacency (one per graph)
    w_ref:   (L, D, D)    bf16  per-layer W^T, zero-padded to (D, D)
    b_ref:   (L, 1, D)    f32   per-layer bias, zero-padded
    o_ref:   (Bt, N, D)   out dtype (bf16 by default)
    """
    # At N=16 the adjacency tile is a handful of vregs, so loading it whole is
    # fine.  For large N (v7x: ~3.5-4k with 64 MiB VMEM) switch to keeping it
    # as a ref and tiling the adj matmul over node rows/cols instead.
    adj = adj_ref[...]                      # (Bt, N, N) bf16, reused every layer
    h = x_ref[...]                          # (Bt, N, D) bf16
    out_f32 = None
    # Static unroll over the small fixed number of layers; w_ref[l]/b_ref[l]
    # use static indices, so each is a plain VMEM load.
    for l in range(n_layer):
        # Row-packed linear: all Bt*N node rows feed the MXU M dimension at
        # once (instead of N=16 rows per push).  Collapse of leading dims is
        # layout-preserving (N is a multiple of the sublane tile 8).
        h2 = h.reshape(batch_tile * n_nodes, d_pad)
        lin = jnp.dot(h2, w_ref[l], preferred_element_type=jnp.float32)  # MXU, f32 acc
        lin = (lin + b_ref[l]).reshape(batch_tile, n_nodes, d_pad)       # bias bcast in f32
        # Batched adjacency matmul, one (N,N)@(N,D) per graph, f32 accumulation.
        # (bf16 adj is exact for 0/1 adjacency; for degree-normalized adj a
        # higher-precision path could be used here — MXU has plenty of slack.)
        out_f32 = jnp.einsum("bnm,bmd->bnd", adj, lin.astype(jnp.bfloat16),
                             preferred_element_type=jnp.float32)
        h = out_f32.astype(jnp.bfloat16)
    o_ref[...] = out_f32.astype(o_ref.dtype)


def prepare_gcn_block_params(params):
    """One-time parameter prep (hoisted OUT of the forward path).

    Stacks per-layer (W^T, b), zero-pads every feature dim to a lane-dense
    multiple of 128 and casts weights to bf16.  Returns (w_stack, b_stack, d_pad)
    which can be reused across every forward call.
    """
    n_layer = len(params)
    dims = [params[0][0].shape[0]] + [w_t.shape[1] for w_t, _ in params]
    d_pad = 128 * pl.cdiv(max(dims), 128)

    w_stack = jnp.zeros((n_layer, d_pad, d_pad), jnp.float32)
    b_stack = jnp.zeros((n_layer, 1, d_pad), jnp.float32)
    for l, (w_t, b) in enumerate(params):
        din, dout = w_t.shape
        w_stack = w_stack.at[l, :din, :dout].set(w_t)
        b_stack = b_stack.at[l, 0, :dout].set(b)
    # Zero-padded rows/cols + zero-padded bias keep pad lanes exactly zero
    # through every layer, so results are unchanged by the padding.
    return w_stack.astype(jnp.bfloat16), b_stack, d_pad


@functools.partial(jax.jit,
                   static_argnames=("out_dim", "batch_tile", "out_dtype"))
def gcn_block_forward(x, adj, w_stack, b_stack, *, out_dim,
                      batch_tile=None, out_dtype=jnp.bfloat16):
    """Pallas implementation of GCNBlock.forward.

    x:       (B, N, in_dim) f32
    adj:     (B, N, N)      f32
    w_stack: (L, d_pad, d_pad) bf16  (from prepare_gcn_block_params)
    b_stack: (L, 1, d_pad)     f32   (from prepare_gcn_block_params)
    returns  (B, N, out_dim) out_dtype
    """
    B, N, in_dim = x.shape
    L, d_pad, _ = w_stack.shape

    if batch_tile is None:
        # Default: exactly 2 equal grid steps when possible, so the v7x
        # megacore (dimension_semantics=("parallel",)) gets one chunk per
        # TensorCore; on v5e/v6e this is just a cheap 2-step loop.  Callers
        # with larger batches can raise batch_tile to pack more rows per step.
        batch_tile = B // 2 if (B % 2 == 0 and B >= 2) else B
    assert B % batch_tile == 0, "batch must divide evenly into batch_tile"

    # Per-call activation prep only (parameter prep is hoisted out): lane-dense
    # zero-pad of x to d_pad and bf16 casts for the MXU.
    x_pad = jnp.zeros((B, N, d_pad), jnp.bfloat16)
    x_pad = x_pad.at[:, :, :in_dim].set(x.astype(jnp.bfloat16))
    adj_bf16 = adj.astype(jnp.bfloat16)

    kernel = functools.partial(_gcn_block_kernel, L, batch_tile, N, d_pad)

    out_itemsize = jnp.dtype(out_dtype).itemsize
    flops = 2 * B * L * (N * d_pad * d_pad + N * N * d_pad)
    bytes_accessed = (x_pad.size * 2 + adj_bf16.size * 2 + w_stack.size * 2
                      + b_stack.size * 4 + B * N * d_pad * out_itemsize)
    cost = pl.CostEstimate(flops=flops, transcendentals=0,
                           bytes_accessed=bytes_accessed)

    # VMEM budget (double-buffered activation blocks + resident weights) with
    # 2x headroom; floor at 32 MiB (> v5e's 16 MiB default), cap at v7x's
    # 64 MiB physical.  Re-derive / tile adj explicitly if N grows large.
    vmem_needed = (2 * batch_tile * N * d_pad * 2          # x blocks (bf16, x2 buf)
                   + 2 * batch_tile * N * N * 2            # adj blocks
                   + 2 * batch_tile * N * d_pad * out_itemsize  # out blocks
                   + 2 * L * d_pad * d_pad * 2             # weights (x2 buffers)
                   + 2 * L * d_pad * 4)                    # biases
    vmem_limit = int(min(64 * 1024 * 1024,
                         max(32 * 1024 * 1024, 2 * vmem_needed)))

    out_pad = pl.pallas_call(
        kernel,
        out_shape=jax.ShapeDtypeStruct((B, N, d_pad), out_dtype),
        grid=(B // batch_tile,),
        in_specs=[
            pl.BlockSpec((batch_tile, N, d_pad), lambda i: (i, 0, 0)),  # x tile
            pl.BlockSpec((batch_tile, N, N), lambda i: (i, 0, 0)),      # adj tile
            # Constant index_map: weights/biases stay resident across grid
            # steps (no re-fetch).  At realistic sizes (large L*d_pad^2) add
            # pipeline_mode=pl.Buffered(1) to these two specs to avoid
            # double-buffering constant blocks; at d_pad=128 it is irrelevant.
            pl.BlockSpec((L, d_pad, d_pad), lambda i: (0, 0, 0)),        # all W^T
            pl.BlockSpec((L, 1, d_pad), lambda i: (0, 0, 0)),            # all biases
        ],
        out_specs=pl.BlockSpec((batch_tile, N, d_pad), lambda i: (i, 0, 0)),
        compiler_params=pltpu.CompilerParams(
            dimension_semantics=("parallel",),    # megacore: batch chunks across TCs
            vmem_limit_bytes=vmem_limit),
        cost_estimate=cost,
    )(x_pad, adj_bf16, w_stack, b_stack)

    # Drop the zero pad lanes; inside jit this slice folds into the consumer.
    return out_pad[:, :, :out_dim]


def init_gcn_block_params(key, n_layer, in_dim, hidden_dim, out_dim):
    """Deterministic params matching GCNBlock's layer shapes.

    Layer i: Linear(in_dim if i==0 else hidden_dim,
                    out_dim if i==n_layer-1 else hidden_dim)
    Weights: xavier_uniform; bias: PyTorch Linear default U(-1/sqrt(fan_in), +).
    Stored as (W^T, b) so the kernel does x @ W^T directly.
    """
    params = []
    for i in range(n_layer):
        d_in = in_dim if i == 0 else hidden_dim
        d_out = out_dim if i == n_layer - 1 else hidden_dim
        key, kw, kb = jax.random.split(key, 3)
        limit = math.sqrt(6.0 / (d_in + d_out))
        w = jax.random.uniform(kw, (d_out, d_in), jnp.float32, -limit, limit)
        bb = 1.0 / math.sqrt(d_in)
        bias = jax.random.uniform(kb, (d_out,), jnp.float32, -bb, bb)
        params.append((w.T, bias))  # (Din, Dout) transposed weight
    return params


def gcn_block_reference(x, adj, params):
    """Plain-JAX f32 reference for validation."""
    h = x
    for w_t, b in params:
        h = jnp.einsum("bnm,bmd->bnd", adj, h @ w_t + b)
    return h


if __name__ == "__main__":
    # Small shapes consistent with the module: batch=2, n_atom=16,
    # in_dim=8, hidden_dim=32, out_dim=32, n_layer=3.
    B, N_ATOM, IN_DIM, HIDDEN_DIM, OUT_DIM, N_LAYER = 2, 16, 8, 32, 32, 3

    key = jax.random.PRNGKey(0)
    key, kx, ka = jax.random.split(key, 3)
    x = jax.random.normal(kx, (B, N_ATOM, IN_DIM), jnp.float32)
    adj = jax.random.uniform(ka, (B, N_ATOM, N_ATOM), jnp.float32)

    params = init_gcn_block_params(key, N_LAYER, IN_DIM, HIDDEN_DIM, OUT_DIM)

    # One-time parameter prep (hoisted out of the forward path).
    w_stack, b_stack, _ = prepare_gcn_block_params(params)
    w_stack = jax.block_until_ready(w_stack)
    b_stack = jax.block_until_ready(b_stack)

    out = gcn_block_forward(x, adj, w_stack, b_stack,
                            out_dim=OUT_DIM, batch_tile=1,
                            out_dtype=jnp.bfloat16)
    out = jax.block_until_ready(out)

    ref = gcn_block_reference(x, adj, params)
    assert out.shape == (B, N_ATOM, OUT_DIM)
    # Kernel uses bf16 matmul inputs/outputs with f32 accumulation, so compare
    # against the pure-f32 reference with a max-normalized bf16-level tolerance.
    rel_err = float(jnp.max(jnp.abs(out.astype(jnp.float32) - ref))
                    / (jnp.max(jnp.abs(ref)) + 1e-8))
    assert rel_err < 5e-2, f"mismatch vs reference: rel_err={rel_err}"

    print("KERNEL_OK")
</pallas_src>

<mosaic_0001>
module attributes {stable_mosaic.version = 11 : i64} {
  func.func @_gcn_block_kernel(%arg0: i32, %arg1: memref<1x16x128xbf16, #tpu.memory_space<vmem>>, %arg2: memref<1x16x16xbf16, #tpu.memory_space<vmem>>, %arg3: memref<3x128x128xbf16, #tpu.memory_space<vmem>>, %arg4: memref<3x1x128xf32, #tpu.memory_space<vmem>>, %arg5: memref<1x16x128xbf16, #tpu.memory_space<vmem>>) attributes {dimension_semantics = [#tpu.dimension_semantics<parallel>], iteration_bounds = array<i64: 2>, scalar_prefetch = 0 : i64, scratch_operands = 0 : i64, tpu.core_type = #tpu.core_type<tc>, window_params = [{transform_indices = @transform_0, window_bounds = array<i64: 1, 16, 128>}, {transform_indices = @transform_1, window_bounds = array<i64: 1, 16, 16>}, {pipeline_mode = #tpu.pipeline_mode<synchronous>, transform_indices = @transform_2, window_bounds = array<i64: 3, 128, 128>}, {pipeline_mode = #tpu.pipeline_mode<synchronous>, transform_indices = @transform_3, window_bounds = array<i64: 3, 1, 128>}, {transform_indices = @transform_4, window_bounds = array<i64: 1, 16, 128>}]} {
    %c0 = arith.constant 0 : index
    %c0_0 = arith.constant 0 : index
    %c0_1 = arith.constant 0 : index
    %0 = vector.load %arg2[%c0, %c0_0, %c0_1] : memref<1x16x16xbf16, #tpu.memory_space<vmem>>, vector<1x16x16xbf16>
    %c0_2 = arith.constant 0 : index
    %c0_3 = arith.constant 0 : index
    %c0_4 = arith.constant 0 : index
    %1 = vector.load %arg1[%c0_2, %c0_3, %c0_4] : memref<1x16x128xbf16, #tpu.memory_space<vmem>>, vector<1x16x128xbf16>
    %2 = vector.shape_cast %1 : vector<1x16x128xbf16> to vector<16x128xbf16>
    %c0_5 = arith.constant 0 : index
    %c0_6 = arith.constant 0 : index
    %c0_7 = arith.constant 0 : index
    %3 = vector.load %arg3[%c0_5, %c0_6, %c0_7] : memref<3x128x128xbf16, #tpu.memory_space<vmem>>, vector<1x128x128xbf16>
    %4 = vector.shape_cast %3 : vector<1x128x128xbf16> to vector<128x128xbf16>
    %cst = arith.constant dense<0.000000e+00> : vector<16x128xf32>
    %5 = tpu.matmul %2, %4, %cst {dimension_numbers = #tpu.dot_dimension_numbers<[1], [0], [0], [1], [0, 0, 1, 1], [], []>} : vector<16x128xbf16>, vector<128x128xbf16>, vector<16x128xf32> -> vector<16x128xf32>
    %c0_8 = arith.constant 0 : index
    %c0_9 = arith.constant 0 : index
    %c0_10 = arith.constant 0 : index
    %6 = vector.load %arg4[%c0_8, %c0_9, %c0_10] : memref<3x1x128xf32, #tpu.memory_space<vmem>>, vector<1x1x128xf32>
    %7 = vector.shape_cast %6 : vector<1x1x128xf32> to vector<1x128xf32>
    %8 = vector.broadcast %7 : vector<1x128xf32> to vector<16x128xf32>
    %9 = arith.addf %5, %8 : vector<16x128xf32>
    %10 = vector.shape_cast %9 : vector<16x128xf32> to vector<1x16x128xf32>
    %11 = arith.truncf %10 : vector<1x16x128xf32> to vector<1x16x128xbf16>
    "tpu.trace_start"() <{level = 10 : i32, message = "bnm,bmd->bnd"}> : () -> ()
    %cst_11 = arith.constant dense<0.000000e+00> : vector<1x16x128xf32>
    %12 = tpu.matmul %0, %11, %cst_11 {dimension_numbers = #tpu.dot_dimension_numbers<[2], [1], [1], [2], [0, 0, 0, 1, 1, 2], [0], [0]>} : vector<1x16x16xbf16>, vector<1x16x128xbf16>, vector<1x16x128xf32> -> vector<1x16x128xf32>
    "tpu.trace_stop"() : () -> ()
    %13 = arith.truncf %12 : vector<1x16x128xf32> to vector<1x16x128xbf16>
    %14 = vector.shape_cast %13 : vector<1x16x128xbf16> to vector<16x128xbf16>
    %c1 = arith.constant 1 : index
    %c0_12 = arith.constant 0 : index
    %c0_13 = arith.constant 0 : index
    %15 = vector.load %arg3[%c1, %c0_12, %c0_13] : memref<3x128x128xbf16, #tpu.memory_space<vmem>>, vector<1x128x128xbf16>
    %16 = vector.shape_cast %15 : vector<1x128x128xbf16> to vector<128x128xbf16>
    %cst_14 = arith.constant dense<0.000000e+00> : vector<16x128xf32>
    %17 = tpu.matmul %14, %16, %cst_14 {dimension_numbers = #tpu.dot_dimension_numbers<[1], [0], [0], [1], [0, 0, 1, 1], [], []>} : vector<16x128xbf16>, vector<128x128xbf16>, vector<16x128xf32> -> vector<16x128xf32>
    %c1_15 = arith.constant 1 : index
    %c0_16 = arith.constant 0 : index
    %c0_17 = arith.constant 0 : index
    %18 = vector.load %arg4[%c1_15, %c0_16, %c0_17] : memref<3x1x128xf32, #tpu.memory_space<vmem>>, vector<1x1x128xf32>
    %19 = vector.shape_cast %18 : vector<1x1x128xf32> to vector<1x128xf32>
    %20 = vector.broadcast %19 : vector<1x128xf32> to vector<16x128xf32>
    %21 = arith.addf %17, %20 : vector<16x128xf32>
    %22 = vector.shape_cast %21 : vector<16x128xf32> to vector<1x16x128xf32>
    %23 = arith.truncf %22 : vector<1x16x128xf32> to vector<1x16x128xbf16>
    "tpu.trace_start"() <{level = 10 : i32, message = "bnm,bmd->bnd"}> : () -> ()
    %cst_18 = arith.constant dense<0.000000e+00> : vector<1x16x128xf32>
    %24 = tpu.matmul %0, %23, %cst_18 {dimension_numbers = #tpu.dot_dimension_numbers<[2], [1], [1], [2], [0, 0, 0, 1, 1, 2], [0], [0]>} : vector<1x16x16xbf16>, vector<1x16x128xbf16>, vector<1x16x128xf32> -> vector<1x16x128xf32>
    "tpu.trace_stop"() : () -> ()
    %25 = arith.truncf %24 : vector<1x16x128xf32> to vector<1x16x128xbf16>
    %26 = vector.shape_cast %25 : vector<1x16x128xbf16> to vector<16x128xbf16>
    %c2 = arith.constant 2 : index
    %c0_19 = arith.constant 0 : index
    %c0_20 = arith.constant 0 : index
    %27 = vector.load %arg3[%c2, %c0_19, %c0_20] : memref<3x128x128xbf16, #tpu.memory_space<vmem>>, vector<1x128x128xbf16>
    %28 = vector.shape_cast %27 : vector<1x128x128xbf16> to vector<128x128xbf16>
    %cst_21 = arith.constant dense<0.000000e+00> : vector<16x128xf32>
    %29 = tpu.matmul %26, %28, %cst_21 {dimension_numbers = #tpu.dot_dimension_numbers<[1], [0], [0], [1], [0, 0, 1, 1], [], []>} : vector<16x128xbf16>, vector<128x128xbf16>, vector<16x128xf32> -> vector<16x128xf32>
    %c2_22 = arith.constant 2 : index
    %c0_23 = arith.constant 0 : index
    %c0_24 = arith.constant 0 : index
    %30 = vector.load %arg4[%c2_22, %c0_23, %c0_24] : memref<3x1x128xf32, #tpu.memory_space<vmem>>, vector<1x1x128xf32>
    %31 = vector.shape_cast %30 : vector<1x1x128xf32> to vector<1x128xf32>
    %32 = vector.broadcast %31 : vector<1x128xf32> to vector<16x128xf32>
    %33 = arith.addf %29, %32 : vector<16x128xf32>
    %34 = vector.shape_cast %33 : vector<16x128xf32> to vector<1x16x128xf32>
    %35 = arith.truncf %34 : vector<1x16x128xf32> to vector<1x16x128xbf16>
    "tpu.trace_start"() <{level = 10 : i32, message = "bnm,bmd->bnd"}> : () -> ()
    %cst_25 = arith.constant dense<0.000000e+00> : vector<1x16x128xf32>
    %36 = tpu.matmul %0, %35, %cst_25 {dimension_numbers = #tpu.dot_dimension_numbers<[2], [1], [1], [2], [0, 0, 0, 1, 1, 2], [0], [0]>} : vector<1x16x16xbf16>, vector<1x16x128xbf16>, vector<1x16x128xf32> -> vector<1x16x128xf32>
    "tpu.trace_stop"() : () -> ()
    %37 = arith.truncf %36 : vector<1x16x128xf32> to vector<1x16x128xbf16>
    %c0_26 = arith.constant 0 : index
    %c0_27 = arith.constant 0 : index
    %c0_28 = arith.constant 0 : index
    %38 = vector.load %arg5[%c0_26, %c0_27, %c0_28] : memref<1x16x128xbf16, #tpu.memory_space<vmem>>, vector<1x16x128xbf16>
    tpu.vector_store %arg5[%c0_26, %c0_27, %c0_28], %37 {strides = array<i32>} : memref<1x16x128xbf16, #tpu.memory_space<vmem>>, vector<1x16x128xbf16>,
    return
  }
  func.func @transform_0(%arg0: i32) -> (i32, i32, i32) {
    %c0_i32 = arith.constant 0 : i32
    %c0_i32_0 = arith.constant 0 : i32
    %c0_i32_1 = arith.constant 0 : i32
    return %arg0, %c0_i32, %c0_i32_0 : i32, i32, i32
  }
  func.func @transform_1(%arg0: i32) -> (i32, i32, i32) {
    %c0_i32 = arith.constant 0 : i32
    %c0_i32_0 = arith.constant 0 : i32
    %c0_i32_1 = arith.constant 0 : i32
    return %arg0, %c0_i32, %c0_i32_0 : i32, i32, i32
  }
  func.func @transform_2(%arg0: i32) -> (i32, i32, i32) {
    %c0_i32 = arith.constant 0 : i32
    %c0_i32_0 = arith.constant 0 : i32
    %c0_i32_1 = arith.constant 0 : i32
    %c0_i32_2 = arith.constant 0 : i32
    return %c0_i32, %c0_i32_0, %c0_i32_1 : i32, i32, i32
  }
  func.func @transform_3(%arg0: i32) -> (i32, i32, i32) {
    %c0_i32 = arith.constant 0 : i32
    %c0_i32_0 = arith.constant 0 : i32
    %c0_i32_1 = arith.constant 0 : i32
    %c0_i32_2 = arith.constant 0 : i32
    return %c0_i32, %c0_i32_0, %c0_i32_1 : i32, i32, i32
  }
  func.func @transform_4(%arg0: i32) -> (i32, i32, i32) {
    %c0_i32 = arith.constant 0 : i32
    %c0_i32_0 = arith.constant 0 : i32
    %c0_i32_1 = arith.constant 0 : i32
    return %arg0, %c0_i32, %c0_i32_0 : i32, i32, i32
  }
}

</mosaic_0001>

<bundles_post_ra>
// kernel: gcn_block_forward.1
= control target key start
LH: loop header
LB: loop body
LE: loop exit
PB: predicated region body
PF: predicated region fallthrough
CT: control target
= control target key end

     0   :  { %9 = vsyncpa [#allocation3], 0  ;;  %s1413_s0 = inlined_call_operand.vmem [shape: bf16[2,16,128], index: 0, kind: input, shape index: {}]   ;;  %s1414_s1 = inlined_call_operand.vmem [shape: bf16[2,16,16], index: 1, kind: input, shape index: {}]   ;;  %s1415_s2 = inlined_call_operand.hbm [shape: bf16[3,128,128], index: 2, kind: input, shape index: {}]   ;;  %s1416_s3 = inlined_call_operand.vmem [shape: f32[3,1,128], index: 3, kind: input, shape index: {}]   ;;  %s1417_s4 = inlined_call_operand.hbm [shape: bf16[2,16,128], index: 4, kind: output, shape index: {}]  }
   0x1   :  { %10 = vsyncpa [#allocation4], 0 }
   0x2   :  { %12 = vsyncpa [#allocation4 + $0x1], 0  ;;  %s1213_s15 = smov 0   ;;  %s1215_s16 = smov 0  }
   0x3   :  { %s1217_s17 = smov 0   ;;  %s1219_s18 = smov 0  }
   0x4 LB: > { %s1234_s19 = sadd.s32 4294967295, %s1178_s18   ;;  %s829_s20 = sadd.s32 4294967294, %s1178_s18   ;;  %s1178_s18 = sphi %s1219_s18, %s1433_s18   ;;  %s1174_s17 = sphi %s1217_s17, %s1432_s17   ;;  %s1170_s16 = sphi %s1215_s16, %s1431_s16   ;;  %s1166_s15 = sphi %s1213_s15, %s1430_s15  }
   0x5   : > { %s1238_s21 = sadd.s32 1, %s1178_s18   ;;  %s119_s22 = sadd.s32 1, %s1174_s17 }
   0x6   : > { %s116_s23 = ssub.s32 %s1178_s18, %s1238_s21  ;;  %p129_p0 = scmp.ne.s32.totalorder %s1174_s17, %s1170_s16 }
   0x7   : > { %p117_p1 = scmp.eq.s32.totalorder %s116_s23, 0  ;;  %p130_p2 = scmp.eq.s32.totalorder %s1234_s19, 1 }
   0x8   : > { %p135_p3 = scmp.ne.s32.totalorder %s1170_s16, %s1166_s15  ;;  %p136_p4 = scmp.eq.s32.totalorder %s829_s20, 1 }
   0x9   : > { %s1249_s24 = scalar_select %p117_p1, %s1174_s17, %s119_s22  }
   0xa   : > { %p1251_p5 = por %p130_p2, %p129_p0  ;;  %p1255_p6 = por %p136_p4, %p135_p3 }
   0xb   : > { %p830_p7 = scmp.ge.s32.totalorder %s1178_s18, 1  ;;  %p143_p8 = scmp.lt.s32.totalorder %s1178_s18, 3 }
   0xc   : > { %s1421_s25 = scalar_select %p1251_p5, 1, 0 }
   0xd   : > { %s1422_s26 = scalar_select %p1255_p6, 1, 0 }
   0xe   : > { %p1418_p9 = scmp.eq.s32.totalorder %s1234_s19, 0  ;;  %p1262_p10 = pnand %p830_p7, %p143_p8 }
   0xf   : > { %s1180_s28 = smov [#allocation2]   ;;  %s1084_s7 = scalar_lea.hbm %s1415_s2, 3072 }
  0x10   : > { %s1423_s27 = scalar_select %p1262_p10, 1, 0 }
  0x11   : > { %s155_s29 = sshll.u32 %s1180_s28, 4  ;;  %p1008_p11 = pneg %p1262_p10  ;;  %s156_s29 = int_to_ptr.vmem [resolvable:$true] %s155_s29 }
  0x12   : > { %p1085_p13 = scmp.ne.s32.totalorder %s1415_s2, %s1084_s7  ;;  %p1091_p3 = scmp.lt.u32.totalorder %s1084_s7, %s1415_s2 }
  0x13   : > { %p1270_p12 = pnand %p1418_p9, %p1008_p11 }
  0x15   : > { %p1086_p0 = pneg %p1270_p12 }
  0x17   : > { %p1087_p1 = pnand %p1086_p0, %p1085_p13 }
  0x19   : > { %p1088_p2 = pneg %p1087_p1 }
  0x1b   : > { %p1093_p4 = pnand %p1091_p3, %p1088_p2 }
  0x1d   : > { %1096 = shalt.err (!%p1093_p4)
}
  0x1e   : > { %s1097_s12 = scalar_lea.vmem %s156_s29, 3072  ;;  %p1105_p9 = scmp.lt.s32.totalorder %s156_s29, %s156_s29 }
  0x1f   : > { %p1098_p7 = scmp.ne.s32.totalorder %s156_s29, %s1097_s12  ;;  %p1106_p6 = scmp.lt.s32.totalorder %s1097_s12, %s1097_s12 }
  0x21   : > { %p1100_p8 = pnand %p1098_p7, %p1086_p0  ;;  %p1107_p5 = por %p1106_p6, %p1105_p9 }
  0x23   : > { %p1101_p11 = pneg %p1100_p8 }
  0x25   : > { %p1108_p10 = pnand %p1107_p5, %p1101_p11 }
  0x27   : > { %1111 = shalt.err (!%p1108_p10)
}
  0x28   : > { %s1181_s13 = smov 64   ;;  %s1182_s14 = smov 4  }
  0x29   : > { %1011 = dma.hbm_to_vmem [thread:$0]  (!%p1270_p12), %s1415_s2, 3072, %s156_s29, [#allocation3], %s1181_s13, %s1181_s13, %s1182_s14  }
  0x2a   : > { %p1425_p13 = scmp.ne.s32.totalorder %s1423_s27, 0 }
  0x2b   : > { %p1426_p1 = scmp.eq.s32.totalorder (!%p1425_p13), %s1234_s19, 0 }
  0x2c   : > { %190 = sbr.rel (%p1425_p13) target bundleno = 1412 (0x584), region = 36 }
  0x33   : > { %1157 = dma.done.wait (%p1426_p1), [#allocation3], 3072   ;;  %p1427_p0 = pmov %p1426_p1 }
  0x34   : > { %v1183_v0 = vmov 0.0   ;;  %vm1184_vm0 = vmmov 0   ;;  %p221_p5 = scmp.lt.s32.totalorder %s1234_s19, 1  ;;  %v1058_v1 = vld [vmem:[#allocation2] sm:$0xff]   ;;  %v1059_v2 = vld [vmem:[#allocation2 + $0x8] sm:$0xff]   ;;  %v1060_v3 = vld [vmem:[#allocation2 + $0x10] sm:$0xff]  }
  0x35   : > { %1159 = vsyncadd (%p1427_p0), [#allocation3], 4294964224  ;;  %924 = vmatprep.subr.bf16.mxu0 %v1183_v0  ;;  %940 = vmatprep.mubr.msk.bf16.mxu0 %vm1184_vm0, %v1183_v0  ;;  %v1061_v4 = vld [vmem:[#allocation2 + $0x18] sm:$0xff]   ;;  %v1062_v5 = vld [vmem:[#allocation2 + $0x20] sm:$0xff]   ;;  %vm360_vm1 = vcmask 130048   ;;  %s218_s14 = sand.u32 1, %s1170_s16  }
  0x36   : > { %950 = vmatprep.subr.bf16.mxu1 %v1183_v0  ;;  %966 = vmatprep.mubr.msk.bf16.mxu1 %vm1184_vm0, %v1183_v0  ;;  %s222_s23 = scalar_select %p221_p5, %s1234_s19, 1  ;;  %v1063_v6 = vld [vmem:[#allocation2 + $0x28] sm:$0xff]   ;;  %v1064_v7 = vld [vmem:[#allocation2 + $0x30] sm:$0xff]   ;;  %v1065_v8 = vld [vmem:[#allocation2 + $0x38] sm:$0xff]  }
  0x37   : > { %925 = vmatpush3.bf16.msra.mxu0 %v1058_v1  ;;  %v1068_v10 = vld [vmem:[#allocation2 + $0x40] sm:$0xff]   ;;  %v1069_v11 = vld [vmem:[#allocation2 + $0x48] sm:$0xff]   ;;  %v1070_v12 = vld [vmem:[#allocation2 + $0x50] sm:$0xff]   ;;  %s835_s20 = sshll.u32 %s218_s14, 3  ;;  %s1372_s5 = scalar_lea.sflag [#allocation4], %s218_s14 }
  0x38   : > { %926 = vmatprep.subr.bf16.mxu0 %v1183_v0  ;;  %s881_s27 = sshll.u32 %s222_s23, 3  ;;  %951 = vmatpush3.bf16.msra.mxu1 %v1068_v10  ;;  %v1071_v13 = vld [vmem:[#allocation2 + $0x58] sm:$0xff]   ;;  %v1072_v14 = vld [vmem:[#allocation2 + $0x60] sm:$0xff]   ;;  %v1073_v15 = vld [vmem:[#allocation2 + $0x68] sm:$0xff]   ;;  %s220_s22 = scalar_lea.vmem [#allocation5], %s835_s20 }
  0x39   : > { %s225_s30 = scalar_lea.vmem %s1413_s0, %s881_s27  ;;  %s1312_s7 = scalar_lea.vmem %s1414_s1, %s881_s27  ;;  %952 = vmatprep.subr.bf16.mxu1 %v1183_v0  ;;  %v1074_v16 = vld [vmem:[#allocation2 + $0x70] sm:$0xff]   ;;  %v840_v17 = vld [vmem:[%s1416_s3] ss:$0 sm:$0xff]  ;;  %v1075_v26 = vld [vmem:[#allocation2 + $0x78] sm:$0xff]  }
  0x3a   : > { %v1066_v9 = vld [vmem:[%s225_s30] sm:$0xff]   ;;  %v1077_v33 = vld [vmem:[#allocation2 + $0x88] sm:$0xff]   ;;  %v1078_v34 = vld [vmem:[#allocation2 + $0x90] sm:$0xff]   ;;  %s743_s23 = sshll.u32 %s220_s22, 4  ;;  %s885_s27 = sshll.u32 %s1234_s19, 7  ;;  %s1365_s23 = int_to_ptr.vmem [resolvable:$true] %s743_s23 }
  0x3b   : > { %927 = vmatpush3.bf16.msra.mxu0 %v1059_v2  ;;  %v1333_v25 = vld [vmem:[%s1312_s7] sm:$0xff]   ;;  %v1079_v35 = vld [vmem:[#allocation2 + $0x98] sm:$0xff]   ;;  %v1081_v37 = vld [vmem:[#allocation2 + $0xa8] sm:$0xff]   ;;  %s1370_s30 = scalar_lea.hbm %s1417_s4, %s885_s27  ;;  %s1112_s6 = scalar_lea.vmem %s1365_s23, 128 }
  0x3c   : > { %928 = vmatprep.subr.bf16.mxu0 %v1183_v0  ;;  %953 = vmatpush3.bf16.msra.mxu1 %v1069_v11  ;;  %v1076_v32 = vld [vmem:[#allocation2 + $0x80] sm:$0xff]   ;;  %v1082_v38 = vld [vmem:[#allocation2 + $0xb0] sm:$0xff]   ;;  %v1083_v47 = vld [vmem:[#allocation2 + $0xb8] sm:$0xff]   ;;  %p1113_p6 = scmp.ne.s32.totalorder %s1365_s23, %s1112_s6  ;;  %p1428_p9 = scmp.ne.s32.totalorder %s1421_s25, 0 }
  0x3d   : > { %954 = vmatprep.subr.bf16.mxu1 %v1183_v0  ;;  %v1080_v36 = vld [vmem:[#allocation2 + $0xa0] sm:$0xff]   ;;  %s1185_s19 = smov [#allocation5]  }
  0x3e   : > { %v853_v39 = vld [vmem:[%s1416_s3 + $0x1] ss:$0 sm:$0xff]  ;;  %v864_v53 = vld [vmem:[%s1416_s3 + $0x2] ss:$0 sm:$0xff]  ;;  %p1114_p10 = pnand %p1113_p6, %p1428_p9  ;;  %s1116_s7 = sshll.u32 %s1185_s19, 4  ;;  %s1117_s7 = int_to_ptr.vmem [resolvable:$false] %s1116_s7 }
  0x3f   : > { %929 = vmatpush3.bf16.msra.mxu0 %v1060_v3  ;;  %s1118_s8 = scalar_lea.vmem %s1117_s7, 256  ;;  %p1119_p2 = scmp.lt.s32.totalorder %s1365_s23, %s1117_s7 }
  0x40   : > { %930 = vmatprep.subr.bf16.mxu0 %v1183_v0  ;;  %955 = vmatpush3.bf16.msra.mxu1 %v1070_v12  ;;  %p1115_p12 = pneg %p1114_p10  ;;  %p1120_p3 = scmp.lt.s32.totalorder %s1118_s8, %s1112_s6 }
  0x41   : > { %956 = vmatprep.subr.bf16.mxu1 %v1183_v0 }
  0x42   : > { %p1121_p4 = por %p1120_p3, %p1119_p2 }
  0x43   : > { %931 = vmatpush3.bf16.msra.mxu0 %v1061_v4 }
  0x44   : > { %932 = vmatprep.subr.bf16.mxu0 %v1183_v0  ;;  %957 = vmatpush3.bf16.msra.mxu1 %v1071_v13  ;;  %p1122_p7 = pnand %p1121_p4, %p1115_p12 }
  0x45   : > { %958 = vmatprep.subr.bf16.mxu1 %v1183_v0 }
  0x47   : > { %933 = vmatpush3.bf16.msra.mxu0 %v1062_v5 }
  0x48   : > { %934 = vmatprep.subr.bf16.mxu0 %v1183_v0  ;;  %959 = vmatpush3.bf16.msra.mxu1 %v1072_v14 }
  0x49   : > { %960 = vmatprep.subr.bf16.mxu1 %v1183_v0 }
  0x4b   : > { %935 = vmatpush3.bf16.msra.mxu0 %v1063_v6 }
  0x4c   : > { %936 = vmatprep.subr.bf16.mxu0 %v1183_v0  ;;  %961 = vmatpush3.bf16.msra.mxu1 %v1073_v15 }
  0x4d   : > { %962 = vmatprep.subr.bf16.mxu1 %v1183_v0 }
  0x4f   : > { %937 = vmatpush3.bf16.msra.mxu0 %v1064_v7 }
  0x50   : > { %938 = vmatprep.subr.bf16.mxu0 %v1183_v0  ;;  %963 = vmatpush3.bf16.msra.mxu1 %v1074_v16 }
  0x51   : > { %964 = vmatprep.subr.bf16.mxu1 %v1183_v0 }
  0x53   : > { %939 = vmatpush3.bf16.msra.mxu0 %v1065_v8 }
  0x54   : > { %944 = vmatprep.subr.bf16.mxu0 %v1183_v0  ;;  %965 = vmatpush3.bf16.msra.mxu1 %v1075_v26 }
  0x55   : > { %976 = vmatprep.subr.bf16.mxu1 %v1183_v0 }
  0x56   : > { %941 = vmatmul.mubr.bf16.vlgmr.msra.gmra.mrb[0].mxu0 %v1066_v9 }
  0x57   : > { %946 = vmatprep.mubr.msk.bf16.mxu0 %vm1184_vm0, %v1183_v0 }
 0x129   : > { %v347_v18 = vpop.f32.mrb[0].mxu0 }
 0x12a   : > { %v942_v19 = vpop.f32.mrb[1].mxu0  ;;  %v348_v21 = vadd.f32 %v840_v17, %v347_v18 }
 0x12b   : > { %v350_v20 = vpop.f32.mrb[2].mxu0 }
 0x12c   : > { %v351_v22 = vadd.f32 %v840_v17, %v350_v20  ;;  %v943_v23 = vpop.f32.mrb[3].mxu0 }
 0x12e   : > { %v354_v24 = vpack.c.bf16 %v351_v22, %v348_v21 }
 0x130   : > { %945 = vmatpush3.bf16.msra.mxu0 %v354_v24 }
 0x131   : > { %970 = vmatprep.subr.bf16.mxu0 %v1183_v0 }
 0x133   : > { %947 = vmatmul.mubr.msk.bf16.vlgmr.msra.gmra.mrb[4].mxu0 %vm360_vm1, %v1333_v25 }
 0x134   : > { %972 = vmatprep.mubr.msk.bf16.mxu0 %vm1184_vm0, %v1183_v0 }
 0x206   : > { %v398_v27 = vpop.f32.mrb[4].mxu0 }
 0x207   : > { %v948_v28 = vpop.f32.mrb[5].mxu0 }
 0x208   : > { %v401_v29 = vpop.f32.mrb[6].mxu0 }
 0x209   : > { %v405_v30 = vpack.c.bf16 %v401_v29, %v398_v27  ;;  %v949_v31 = vpop.f32.mrb[7].mxu0 }
 0x20b   : > { %967 = vmatmul.mubr.bf16.vlgmr.msra.gmra.mrb[0].mxu1 %v405_v30 }
 0x20c   : > { %992 = vmatprep.mubr.msk.bf16.mxu1 %vm1184_vm0, %v1183_v0  ;;  %977 = vmatpush3.bf16.msra.mxu1 %v1076_v32 }
 0x20d   : > { %978 = vmatprep.subr.bf16.mxu1 %v1183_v0 }
 0x210   : > { %979 = vmatpush3.bf16.msra.mxu1 %v1077_v33 }
 0x211   : > { %980 = vmatprep.subr.bf16.mxu1 %v1183_v0 }
 0x214   : > { %981 = vmatpush3.bf16.msra.mxu1 %v1078_v34 }
 0x215   : > { %982 = vmatprep.subr.bf16.mxu1 %v1183_v0 }
 0x218   : > { %983 = vmatpush3.bf16.msra.mxu1 %v1079_v35 }
 0x219   : > { %984 = vmatprep.subr.bf16.mxu1 %v1183_v0 }
 0x21c   : > { %985 = vmatpush3.bf16.msra.mxu1 %v1080_v36 }
 0x21d   : > { %986 = vmatprep.subr.bf16.mxu1 %v1183_v0 }
 0x220   : > { %987 = vmatpush3.bf16.msra.mxu1 %v1081_v37 }
 0x221   : > { %988 = vmatprep.subr.bf16.mxu1 %v1183_v0 }
 0x224   : > { %989 = vmatpush3.bf16.msra.mxu1 %v1082_v38 }
 0x225   : > { %990 = vmatprep.subr.bf16.mxu1 %v1183_v0 }
 0x228   : > { %991 = vmatpush3.bf16.msra.mxu1 %v1083_v47 }
 0x2de   : > { %v513_v40 = vpop.f32.mrb[0].mxu1 }
 0x2df   : > { %v968_v41 = vpop.f32.mrb[1].mxu1  ;;  %v514_v43 = vadd.f32 %v853_v39, %v513_v40 }
 0x2e0   : > { %v516_v42 = vpop.f32.mrb[2].mxu1 }
 0x2e1   : > { %v517_v44 = vadd.f32 %v853_v39, %v516_v42  ;;  %v969_v45 = vpop.f32.mrb[3].mxu1 }
 0x2e3   : > { %v520_v46 = vpack.c.bf16 %v517_v44, %v514_v43 }
 0x2e5   : > { %971 = vmatpush3.bf16.msra.mxu0 %v520_v46 }
 0x2e6   : > { %996 = vmatprep.subr.bf16.mxu0 %v1183_v0 }
 0x2e8   : > { %973 = vmatmul.mubr.msk.bf16.vlgmr.msra.gmra.mrb[8].mxu0 %vm360_vm1, %v1333_v25 }
 0x2e9   : > { %998 = vmatprep.mubr.msk.bf16.mxu0 %vm1184_vm0, %v1183_v0 }
 0x3bb   : > { %v555_v48 = vpop.f32.mrb[8].mxu0 }
 0x3bc   : > { %v974_v49 = vpop.f32.mrb[9].mxu0 }
 0x3bd   : > { %v558_v50 = vpop.f32.mrb[10].mxu0 }
 0x3be   : > { %v562_v51 = vpack.c.bf16 %v558_v50, %v555_v48  ;;  %v975_v52 = vpop.f32.mrb[11].mxu0 }
 0x3c0   : > { %993 = vmatmul.mubr.bf16.vlgmr.msra.gmra.mrb[4].mxu1 %v562_v51 }
 0x493   : > { %v670_v54 = vpop.f32.mrb[4].mxu1 }
 0x494   : > { %v994_v55 = vpop.f32.mrb[5].mxu1  ;;  %v671_v57 = vadd.f32 %v864_v53, %v670_v54 }
 0x495   : > { %v673_v56 = vpop.f32.mrb[6].mxu1 }
 0x496   : > { %v674_v58 = vadd.f32 %v864_v53, %v673_v56  ;;  %v995_v59 = vpop.f32.mrb[7].mxu1 }
 0x498   : > { %v677_v60 = vpack.c.bf16 %v674_v58, %v671_v57 }
 0x49a   : > { %997 = vmatpush3.bf16.msra.mxu0 %v677_v60 }
 0x49d   : > { %999 = vmatmul.mubr.msk.bf16.vlgmr.msra.gmra.mrb[12].mxu0 %vm360_vm1, %v1333_v25 }
 0x570   : > { %v712_v61 = vpop.f32.mrb[12].mxu0 }
 0x571   : > { %v1000_v62 = vpop.f32.mrb[13].mxu0 }
 0x572   : > { %v715_v63 = vpop.f32.mrb[14].mxu0 }
 0x573   : > { %v889_v0 = vpack.c.bf16 %v715_v63, %v712_v61  ;;  %v1001_v1 = vpop.f32.mrb[15].mxu0 }
 0x575   : > { %890 = vst [vmem:[%s220_s22] sm:$0xff] %v889_v0  }
 0x576   : > { %1125 = shalt.err (!%p1122_p7)
}
 0x577   : > { %s1126_s9 = scalar_lea.hbm %s1370_s30, 128  ;;  %s1130_s12 = scalar_lea.hbm %s1417_s4, 256 }
 0x578   : > { %p1127_p8 = scmp.ne.s32.totalorder %s1370_s30, %s1126_s9  ;;  %p1131_p1 = scmp.lt.u32.totalorder %s1370_s30, %s1417_s4 }
 0x579   : > { %p1132_p0 = scmp.lt.u32.totalorder %s1130_s12, %s1126_s9  ;;  %p1134_p6 = scmp.lt.u32.totalorder %s1126_s9, %s1370_s30 }
 0x57a   : > { %p1128_p11 = pnand %p1127_p8, %p1428_p9 }
 0x57b   : > { %p1133_p5 = por %p1132_p0, %p1131_p1 }
 0x57c   : > { %p1129_p13 = pneg %p1128_p11 }
 0x57d   : > { %p1135_p10 = por %p1134_p6, %p1133_p5 }
 0x57f   : > { %p1136_p12 = pnand %p1135_p10, %p1129_p13 }
 0x581   : > { %1139 = shalt.err (!%p1136_p12)
}
 0x582   : > { %s1186_s20 = smov 64   ;;  %s1187_s22 = smov 4  }
 0x583   : > { %1006 = dma.vmem_to_hbm [thread:$0]  (%p1428_p9), %s1365_s23, 128, %s1370_s30, %s1372_s5, %s1186_s20, %s1186_s20, %s1187_s22  }
 0x584 PF: > { %p1018_p2 = scmp.ge.s32.totalorder %s1178_s18, 2  ;;  %s758_s27 = sand.u32 1, %s1166_s15  }
 0x585   : > { %p1429_p3 = scmp.ne.s32.totalorder %s1422_s26, 0  ;;  %s759_s28 = scalar_lea.sflag [#allocation4], %s758_s27 }
 0x587   : > { %p1013_p4 = pnand %p1018_p2, %p1429_p3 }
 0x589   : > { %1161 = dma.done.wait (!%p1013_p4), %s759_s28, 128  }
 0x58a   : > { %1163 = vsyncadd (!%p1013_p4), %s759_s28, 4294967168  ;;  %p15_p7 = scmp.ge.s32.totalorder %s1238_s21, 4   ;;  %s1430_s15 = smov %s1170_s16 }
 0x58b   : > { %s1431_s16 = smov %s1174_s17  ;;  %s1432_s17 = smov %s1249_s24 }
 0x58c   : > { %s1433_s18 = smov %s1238_s21  ;;  %17 = sbr.rel (!%p15_p7) target bundleno = 4 (0x4), region = 83 }
 0x593   :  { %764 = vsyncpa [#allocation3], 1 }
 0x594   :  { %766 = vsyncpa [#allocation3 + $0x1], 1 }
 0x595   :  { %767 = vsyncpa [#allocation4], 1 }
 0x596   :  { %769 = vsyncpa [#allocation4 + $0x1], 1 }

</bundles_post_ra>
